<compile_context>
chip_gen: v7x
topology: tpu7x:2x2x1
jax: 0.10.0
libtpu: 0.0.40
codegen_flags: <defaults>
</compile_context>

<pallas_src>
import math

import jax
import jax.numpy as jnp
from jax.experimental import pallas as pl
from jax.experimental.pallas import tpu as pltpu


def _round_up(x, m):
    return ((x + m - 1) // m) * m


def _round_down(x, m):
    return (x // m) * m


def layerscale_kernel(x_ref, g_ref, o_ref):
    # x_ref: (br, D) tile; g_ref: (1, D) broadcast over rows; o_ref in the
    # promoted dtype.  One VPU multiply per element; DMA/HBM is the bottleneck.
    o_ref[...] = x_ref[...].astype(o_ref.dtype) * g_ref[...]


def layer_scale(x, gamma, *, inplace=False, vmem_budget_bytes=24 << 20):
    """LayerScale forward: y = x * gamma (gamma broadcast over leading dims).

    x:     (..., D)
    gamma: (D,)
    inplace=True requests buffer reuse (input_output_aliases={0: 0}), matching
    the PyTorch `inplace=True` path; only applied when dtypes allow aliasing.
    """
    orig_shape = x.shape
    D = orig_shape[-1]
    out_dtype = jnp.result_type(x.dtype, gamma.dtype)

    x2 = x.reshape(-1, D)  # (N, D), channels on the lane axis
    N = x2.shape[0]
    if N == 0 or D == 0:
        return jnp.zeros(orig_shape, out_dtype)

    g = gamma.astype(out_dtype)

    # Lane-densify: if D is not a multiple of 128, fold k consecutive rows into
    # one row of width k*D (k*D % 128 == 0) and tile gamma k times.  Keeps
    # output stores unmasked.  Falls back to plain D (correct, masked stores)
    # when N % k != 0.
    k = 128 // math.gcd(D, 128)
    if k > 1 and N % k == 0:
        N_eff, D_eff = N // k, k * D
        x2 = x2.reshape(N_eff, D_eff)
        g2 = jnp.tile(g, (k,)).reshape(1, D_eff)
    else:
        N_eff, D_eff = N, D
        g2 = g.reshape(1, D)

    x_it = jnp.dtype(x.dtype).itemsize
    o_it = jnp.dtype(out_dtype).itemsize
    g_it = o_it

    # Sublane packing multiple for the narrowest participating dtype
    # (8 for f32, 16 for bf16, 32 for int8/fp8).
    packing = max(8, 32 // x_it, 32 // o_it)

    # VMEM-budget-driven row tile: double-buffered x + double-buffered output.
    bytes_per_row_pipelined = 2 * D_eff * x_it + 2 * D_eff * o_it
    br_budget = max(
        packing,
        _round_down(max(vmem_budget_bytes // bytes_per_row_pipelined, 1), packing),
    )

    if N_eff <= packing:
        br = N_eff  # single full-extent block (can't split below one sublane group)
    else:
        # Guarantee >= 2 grid steps so v7x's two TensorCores both get work.
        br_half = _round_up(pl.cdiv(N_eff, 2), packing)
        br = max(packing, min(br_budget, br_half))
    grid = (pl.cdiv(N_eff, br),)

    # Scoped-VMEM limit sized to what the pipeline actually needs (+headroom);
    # raises v5e's 16 MiB default when using large tiles, stays under v7x's
    # 64 MiB physical VMEM.
    total_pipelined = br * bytes_per_row_pipelined + 2 * D_eff * g_it
    vmem_limit = int(min(48 << 20, max(total_pipelined + (4 << 20), 16 << 20)))

    cost = pl.CostEstimate(
        flops=int(N) * int(D),
        transcendentals=0,
        bytes_accessed=int(N) * int(D) * (x_it + o_it) + int(D) * g_it,
    )

    io_alias = {}
    if inplace and out_dtype == jnp.dtype(x.dtype):
        io_alias = {0: 0}  # x is input 0 (num_scalar_prefetch=0) -> output 0

    out = pl.pallas_call(
        layerscale_kernel,
        out_shape=jax.ShapeDtypeStruct((N_eff, D_eff), out_dtype),
        grid_spec=pltpu.PrefetchScalarGridSpec(
            num_scalar_prefetch=0,
            grid=grid,
            in_specs=[
                pl.BlockSpec((br, D_eff), lambda i: (i, 0)),  # x row-tile
                pl.BlockSpec((1, D_eff), lambda i: (0, 0)),   # gamma (constant block)
            ],
            out_specs=pl.BlockSpec((br, D_eff), lambda i: (i, 0)),
        ),
        compiler_params=pltpu.CompilerParams(
            dimension_semantics=("parallel",),
            vmem_limit_bytes=vmem_limit,
        ),
        cost_estimate=cost,
        input_output_aliases=io_alias,
    )(x2, g2)

    return out.reshape(orig_shape)


if __name__ == "__main__":
    # Config consistent with the module: per-channel scale over the last dim.
    B, S, dim = 2, 8, 256
    init_values = 1e-5

    key = jax.random.PRNGKey(0)
    kx, kg, kx2 = jax.random.split(key, 3)
    x = jax.random.normal(kx, (B, S, dim), jnp.float32)
    # Module initializes gamma = init_values * ones(dim); perturb slightly so the
    # correctness check exercises true per-channel scaling.
    gamma = init_values * (1.0 + 0.1 * jax.random.normal(kg, (dim,), jnp.float32))

    # Default (out-of-place) path.
    y = layer_scale(x, gamma)
    jax.block_until_ready(y)
    y_ref = x * gamma
    assert y.shape == x.shape and y.dtype == y_ref.dtype
    assert bool(jnp.all(jnp.isfinite(y)))
    assert bool(jnp.allclose(y, y_ref, rtol=1e-6, atol=1e-6))

    # Inplace path (matches x.mul_(gamma)); gamma kept in x.dtype so aliasing is legal.
    x_in = x + 0.0
    y_inpl = layer_scale(x_in, gamma.astype(x.dtype), inplace=True)
    jax.block_until_ready(y_inpl)
    assert bool(jnp.allclose(y_inpl, y_ref, rtol=1e-6, atol=1e-6))

    # Non-128-multiple channel dim + mixed dtype: exercises the lane-densify fold
    # (192 -> fold k=2 -> lane width 384) and PyTorch-style type promotion
    # (bf16 x, f32 gamma -> f32 output).
    dim2 = 192
    x3 = jax.random.normal(kx2, (B, S, dim2), jnp.float32).astype(jnp.bfloat16)
    g3 = init_values * (1.0 + 0.1 * jax.random.normal(kg, (dim2,), jnp.float32))
    y3 = layer_scale(x3, g3)
    jax.block_until_ready(y3)
    y3_ref = x3 * g3  # jnp promotes bf16*f32 -> f32, same as the kernel
    assert y3.dtype == jnp.float32
    assert bool(jnp.allclose(y3, y3_ref, rtol=1e-6, atol=1e-6))

    print("KERNEL_OK")
</pallas_src>

<mosaic_0001>
module attributes {stable_mosaic.version = 11 : i64} {
  func.func @layerscale_kernel(%arg0: i32, %arg1: memref<8x256xf32, #tpu.memory_space<vmem>>, %arg2: memref<1x256xf32, #tpu.memory_space<vmem>>, %arg3: memref<8x256xf32, #tpu.memory_space<vmem>>) attributes {dimension_semantics = [#tpu.dimension_semantics<parallel>], iteration_bounds = array<i64: 2>, scalar_prefetch = 0 : i64, scratch_operands = 0 : i64, tpu.core_type = #tpu.core_type<tc>, window_params = [{transform_indices = @transform_0, window_bounds = array<i64: 8, 256>}, {pipeline_mode = #tpu.pipeline_mode<synchronous>, transform_indices = @transform_1, window_bounds = array<i64: 1, 256>}, {transform_indices = @transform_2, window_bounds = array<i64: 8, 256>}]} {
    %c0 = arith.constant 0 : index
    %c0_0 = arith.constant 0 : index
    %0 = vector.load %arg1[%c0, %c0_0] : memref<8x256xf32, #tpu.memory_space<vmem>>, vector<8x256xf32>
    %c0_1 = arith.constant 0 : index
    %c0_2 = arith.constant 0 : index
    %1 = vector.load %arg2[%c0_1, %c0_2] : memref<1x256xf32, #tpu.memory_space<vmem>>, vector<1x256xf32>
    %2 = vector.broadcast %1 : vector<1x256xf32> to vector<8x256xf32>
    %3 = arith.mulf %0, %2 : vector<8x256xf32>
    %c0_3 = arith.constant 0 : index
    %c0_4 = arith.constant 0 : index
    %4 = vector.load %arg3[%c0_3, %c0_4] : memref<8x256xf32, #tpu.memory_space<vmem>>, vector<8x256xf32>
    tpu.vector_store %arg3[%c0_3, %c0_4], %3 {strides = array<i32>} : memref<8x256xf32, #tpu.memory_space<vmem>>, vector<8x256xf32>,
    return
  }
  func.func @transform_0(%arg0: i32) -> (i32, i32) {
    %c0_i32 = arith.constant 0 : i32
    %c0_i32_0 = arith.constant 0 : i32
    return %arg0, %c0_i32 : i32, i32
  }
  func.func @transform_1(%arg0: i32) -> (i32, i32) {
    %c0_i32 = arith.constant 0 : i32
    %c0_i32_0 = arith.constant 0 : i32
    %c0_i32_1 = arith.constant 0 : i32
    return %c0_i32, %c0_i32_0 : i32, i32
  }
  func.func @transform_2(%arg0: i32) -> (i32, i32) {
    %c0_i32 = arith.constant 0 : i32
    %c0_i32_0 = arith.constant 0 : i32
    return %arg0, %c0_i32 : i32, i32
  }
}

</mosaic_0001>

<bundles_post_ra>
// kernel: tpu_custom_call.1
= control target key start
LH: loop header
LB: loop body
LE: loop exit
PB: predicated region body
PF: predicated region fallthrough
CT: control target
= control target key end

     0   :  { %7 = vsyncpa [#allocation3], 0  ;;  %s604_s0 = inlined_call_operand.hbm [shape: f32[16,256], index: 0, kind: input, shape index: {}]   ;;  %s605_s1 = inlined_call_operand.vmem [shape: f32[1,256], index: 1, kind: input, shape index: {}]   ;;  %s606_s2 = inlined_call_operand.hbm [shape: f32[16,256], index: 2, kind: output, shape index: {}]  }
   0x1   :  { %9 = vsyncpa [#allocation3 + $0x1], 0 }
   0x2   :  { %10 = vsyncpa [#allocation4], 0 }
   0x3   :  { %12 = vsyncpa [#allocation4 + $0x1], 0  ;;  %s440_s9 = smov 0   ;;  %s442_s10 = smov 0  }
   0x4   :  { %s444_s11 = smov 0   ;;  %s446_s12 = smov 0  }
   0x5 LB: > { %s461_s13 = sadd.s32 4294967295, %s421_s12   ;;  %s263_s14 = sadd.s32 4294967294, %s421_s12   ;;  %s421_s12 = sphi %s446_s12, %s621_s12   ;;  %s417_s11 = sphi %s444_s11, %s620_s11   ;;  %s413_s10 = sphi %s442_s10, %s619_s10   ;;  %s409_s9 = sphi %s440_s9, %s618_s9  }
   0x6   : > { %s465_s15 = sadd.s32 1, %s421_s12   ;;  %s25_s16 = sadd.s32 1, %s417_s11 }
   0x7   : > { %s22_s17 = ssub.s32 %s421_s12, %s465_s15  ;;  %p32_p0 = scmp.ne.s32.totalorder %s417_s11, %s413_s10 }
   0x8   : > { %p23_p1 = scmp.eq.s32.totalorder %s22_s17, 0  ;;  %p33_p2 = scmp.eq.s32.totalorder %s421_s12, 0 }
   0x9   : > { %p38_p3 = scmp.ne.s32.totalorder %s413_s10, %s409_s9  ;;  %p39_p4 = scmp.eq.s32.totalorder %s461_s13, 0 }
   0xa   : > { %s477_s18 = scalar_select %p23_p1, %s417_s11, %s25_s16  }
   0xb   : > { %p479_p5 = por %p33_p2, %p32_p0  ;;  %p483_p6 = por %p39_p4, %p38_p3 }
   0xc   : > { %p83_p7 = scmp.eq.s32.totalorder %s461_s13, 1  ;;  %p89_p8 = scmp.eq.s32.totalorder %s263_s14, 1 }
   0xd   : > { %p291_p10 = scmp.lt.s32.totalorder %s421_s12, 2  ;;  %s112_s23 = sand.u32 1, %s417_s11  }
   0xe   : > { %p490_p11 = por %p83_p7, %p32_p0  ;;  %p494_p12 = por %p89_p8, %p38_p3 }
   0xf   : > { %s277_s24 = sshll.u32 %s421_s12, 8  ;;  %s266_s25 = sshll.u32 %s112_s23, 4 }
  0x10   : > { %s610_s21 = scalar_select %p490_p11, 1, 0 }
  0x11   : > { %s611_s22 = scalar_select %p494_p12, 1, 0 }
  0x12   : > { %s503_s28 = scalar_lea.hbm %s604_s0, %s277_s24  ;;  %s116_s29 = scalar_lea.vmem [#allocation2], %s266_s25 }
  0x13   : > { %s124_s30 = sshll.u32 %s116_s29, 4  ;;  %p507_p13 = pnand %p291_p10, %p479_p5  ;;  %s511_s30 = int_to_ptr.vmem [resolvable:$true] %s124_s30 }
  0x14   : > { %s113_s4 = scalar_lea.sflag [#allocation3], %s112_s23  ;;  %s325_s5 = scalar_lea.hbm %s503_s28, 256 }
  0x15   : > { %p326_p2 = scmp.ne.s32.totalorder %s503_s28, %s325_s5  ;;  %p327_p3 = pneg %p507_p13 }
  0x16   : > { %s330_s8 = scalar_lea.hbm %s604_s0, 512  ;;  %p331_p5 = scmp.lt.u32.totalorder %s503_s28, %s604_s0 }
  0x17   : > { %p328_p4 = pnand %p327_p3, %p326_p2  ;;  %p332_p8 = scmp.lt.u32.totalorder %s330_s8, %s325_s5 }
  0x18   : > { %p334_p9 = scmp.lt.u32.totalorder %s325_s5, %s503_s28 }
  0x19   : > { %p329_p7 = pneg %p328_p4  ;;  %p333_p10 = por %p332_p8, %p331_p5 }
  0x1b   : > { %p335_p0 = por %p334_p9, %p333_p10 }
  0x1d   : > { %p336_p1 = pnand %p335_p0, %p329_p7 }
  0x1f   : > { %339 = shalt.err (!%p336_p1)
}
  0x20   : > { %s340_s17 = scalar_lea.vmem %s511_s30, 256  ;;  %s423_s19 = smov [#allocation2]  }
  0x21   : > { %p341_p2 = scmp.ne.s32.totalorder %s511_s30, %s340_s17  ;;  %s345_s23 = sshll.u32 %s423_s19, 4  ;;  %s346_s23 = int_to_ptr.vmem [resolvable:$false] %s345_s23 }
  0x22   : > { %s347_s24 = scalar_lea.vmem %s346_s23, 512  ;;  %p348_p11 = scmp.lt.s32.totalorder %s511_s30, %s346_s23 }
  0x23   : > { %p343_p4 = pnand %p341_p2, %p327_p3  ;;  %p349_p5 = scmp.lt.s32.totalorder %s347_s24, %s340_s17 }
  0x25   : > { %p344_p12 = pneg %p343_p4  ;;  %p350_p8 = por %p349_p5, %p348_p11 }
  0x27   : > { %p351_p9 = pnand %p350_p8, %p344_p12 }
  0x29   : > { %354 = shalt.err (!%p351_p9)
}
  0x2a   : > { %286 = dma.hbm_to_vmem [thread:$0]  (!%p507_p13), %s503_s28, 256, %s511_s30, %s113_s4  }
  0x2b   : > { %p613_p0 = scmp.lt.s32.totalorder %s421_s12, 3  ;;  %p614_p1 = scmp.ge.s32.totalorder %s421_s12, 1 }
  0x2d   : > { %p130_p3 = pnand %p614_p1, %p613_p0 }
  0x2e   : > { %s545_s25 = sand.u32 (!%p130_p3), 1, %s413_s10  }
  0x2f   : > { %133 = sbr.rel (%p130_p3) target bundleno = 81 (0x51), region = 28  ;;  %s270_s26 = sshll.u32 (!%p130_p3), %s545_s25, 4 }
  0x30   : > { %s136_s27 = scalar_lea.sflag (!%p130_p3), [#allocation3], %s545_s25  ;;  %s139_s29 = scalar_lea.vmem (!%p130_p3), [#allocation2], %s270_s26 }
  0x36   : > { %400 = dma.done.wait (%p483_p6), %s136_s27, 256  }
  0x37   : > { %402 = vsyncadd (%p483_p6), %s136_s27, 4294967040  ;;  %v164_v0 = vlaneseq  ;;  %v160_v4 = vld [vmem:[%s139_s29] sm:$0xff]  ;;  %s159_s3 = scalar_lea.vmem [#allocation5], %s270_s26  ;;  %v161_v6 = vld [vmem:[%s139_s29 + $0x8] sm:$0xff]  ;;  %s278_s5 = sshll.u32 %s461_s13, 8 }
  0x38   : > { %v162_v5 = vld [vmem:[%s605_s1] sm:$0x3]  ;;  %s193_s4 = sshll.u32 %s159_s3, 4  ;;  %s562_s7 = scalar_lea.hbm %s606_s2, %s278_s5  ;;  %s557_s4 = int_to_ptr.vmem [resolvable:$true] %s193_s4 }
  0x39   : > { %v165_v1 = vshrl.u32 %v164_v0, 7  ;;  %s179_s8 = scalar_lea.sflag [#allocation4], %s545_s25  ;;  %s355_s14 = scalar_lea.vmem %s557_s4, 256 }
  0x3a   : > { %p356_p6 = scmp.ne.s32.totalorder %s557_s4, %s355_s14  ;;  %p615_p11 = scmp.ne.s32.totalorder %s610_s21, 0 }
  0x3b   : > { %v166_v2 = vsub.s32 0, %v165_v1  ;;  %v170_v3 = vsub.s32 1, %v165_v1  ;;  %s424_s13 = smov [#allocation5]  }
  0x3c   : > { %p357_p12 = pnand %p356_p6, %p615_p11  ;;  %s359_s16 = sshll.u32 %s424_s13, 4  ;;  %s360_s16 = int_to_ptr.vmem [resolvable:$false] %s359_s16 }
  0x3d   : > { %v167_v7 = vrot.slane %v162_v5, %v166_v2  ;;  %v171_v8 = vrot.slane %v162_v5, %v170_v3  ;;  %s361_s17 = scalar_lea.vmem %s360_s16, 512  ;;  %p362_p7 = scmp.lt.s32.totalorder %s557_s4, %s360_s16 }
  0x3e   : > { %p358_p13 = pneg %p357_p12  ;;  %p363_p10 = scmp.lt.s32.totalorder %s361_s17, %s355_s14 }
  0x3f   : > { %v174_v9 = vmul.f32 %v167_v7, %v160_v4  ;;  %v175_v10 = vmul.f32 %v171_v8, %v161_v6 }
  0x40   : > { %p364_p2 = por %p363_p10, %p362_p7 }
  0x41   : > { %176 = vst [vmem:[%s159_s3] sm:$0xff] %v174_v9  ;;  %177 = vst [vmem:[%s159_s3 + $0x8] sm:$0xff] %v175_v10 }
  0x42   : > { %p365_p4 = pnand %p364_p2, %p358_p13 }
  0x44   : > { %368 = shalt.err (!%p365_p4)
}
  0x45   : > { %s369_s19 = scalar_lea.hbm %s562_s7, 256  ;;  %s373_s25 = scalar_lea.hbm %s606_s2, 512 }
  0x46   : > { %p370_p5 = scmp.ne.s32.totalorder %s562_s7, %s369_s19  ;;  %p374_p0 = scmp.lt.u32.totalorder %s562_s7, %s606_s2 }
  0x47   : > { %p375_p1 = scmp.lt.u32.totalorder %s373_s25, %s369_s19  ;;  %p377_p6 = scmp.lt.u32.totalorder %s369_s19, %s562_s7 }
  0x48   : > { %p371_p8 = pnand %p370_p5, %p615_p11 }
  0x49   : > { %p376_p3 = por %p375_p1, %p374_p0 }
  0x4a   : > { %p372_p9 = pneg %p371_p8 }
  0x4b   : > { %p378_p12 = por %p377_p6, %p376_p3 }
  0x4d   : > { %p379_p13 = pnand %p378_p12, %p372_p9 }
  0x4f   : > { %382 = shalt.err (!%p379_p13)
}
  0x50   : > { %281 = dma.vmem_to_hbm [thread:$0]  (%p615_p11), %s557_s4, 256, %s562_s7, %s179_s8  }
  0x51 PF: > { %s205_s29 = sand.u32 1, %s409_s9   ;;  %p616_p7 = scmp.ne.s32.totalorder %s611_s22, 0 }
  0x52   : > { %p617_p10 = scmp.ge.s32.totalorder %s421_s12, 2  ;;  %s206_s28 = scalar_lea.sflag [#allocation4], %s205_s29 }
  0x54   : > { %p288_p2 = pnand %p617_p10, %p616_p7 }
  0x56   : > { %404 = dma.done.wait (!%p288_p2), %s206_s28, 256  }
  0x57   : > { %406 = vsyncadd (!%p288_p2), %s206_s28, 4294967040  ;;  %p15_p4 = scmp.ge.s32.totalorder %s465_s15, 4   ;;  %s618_s9 = smov %s413_s10 }
  0x58   : > { %s619_s10 = smov %s417_s11  ;;  %s620_s11 = smov %s477_s18 }
  0x59   : > { %s621_s12 = smov %s465_s15  ;;  %17 = sbr.rel (!%p15_p4) target bundleno = 5 (0x5), region = 73 }
  0x60   :  { %211 = vsyncpa [#allocation3], 1 }
  0x61   :  { %213 = vsyncpa [#allocation3 + $0x1], 1 }
  0x62   :  { %214 = vsyncpa [#allocation4], 1 }
  0x63   :  { %216 = vsyncpa [#allocation4 + $0x1], 1 }

</bundles_post_ra>
